<compile_context>
chip_gen: v5e
topology: v5e:2x2
jax: 0.10.0
libtpu: 0.0.40
codegen_flags: <defaults>
</compile_context>

<pallas_src>
import functools

import jax
import jax.numpy as jnp
from jax.experimental import pallas as pl
from jax.experimental.pallas import tpu as pltpu

BLUE_FIRST_UNITS = 128
BLUE_HIDDEN_UNITS = 128
BLUE_INPUT_DIM = 16
BLUE_OUTPUT_DIM = 16
NUM_HIDDEN_LAYERS_BLUE = 5
NUM_LINEAR = 2 + NUM_HIDDEN_LAYERS_BLUE  # 7 linear layers total

PAD = 128                 # lane-dense padded feature width for hidden/output
_MIN_ROWS_PER_TILE = 256  # only force a 2-way grid split when tiles stay >= this


def _round_up(n, m):
    return ((n + m - 1) // m) * m


def _cdiv(a, b):
    return -(-a // b)


def _mlp_kernel(x_ref, w_ref, b_ref, out_ref, *, num_splits):
    # x_ref: (block_b, 16)   w_ref: (7, 128, 128)   b_ref: (7, 1, 128)
    # out_ref: (block_b, 128) lane-dense slab; cols 16..127 sliced off outside.
    block_b = x_ref.shape[0]
    rows = block_b // num_splits

    # num_splits independent sub-tiles -> independent MXU chains the scheduler
    # can interleave (hides inter-layer MRF drain + bias/ReLU epilogue on
    # v5e/v6e; neutral on v7x).
    hs = [x_ref[s * rows:(s + 1) * rows, :] for s in range(num_splits)]

    # Layer 0: K = 16 (input is NOT lane-padded); use only the live weight rows.
    w0 = w_ref[0, :BLUE_INPUT_DIM, :]
    b0 = b_ref[0]
    hs = [
        jnp.maximum(jnp.dot(h, w0, preferred_element_type=jnp.float32) + b0, 0.0)
        for h in hs
    ]

    # Layers 1..6: uniform 128x128 MXU matmuls (f32 multi-pass for exactness).
    for li in range(1, NUM_LINEAR):
        w = w_ref[li]          # (128, 128)
        b = b_ref[li]          # (1, 128), broadcasts over rows
        if li < NUM_LINEAR - 1:
            hs = [
                jnp.maximum(
                    jnp.dot(h, w, preferred_element_type=jnp.float32) + b, 0.0)
                for h in hs
            ]
        else:
            hs = [
                jax.nn.sigmoid(
                    jnp.dot(h, w, preferred_element_type=jnp.float32) + b)
                for h in hs
            ]

    for s in range(num_splits):
        out_ref[s * rows:(s + 1) * rows, :] = hs[s].astype(out_ref.dtype)


def _vmem_limit_bytes(block_b):
    # Double-buffered in/out tiles + resident parameter pack + live f32
    # intermediates, with headroom. Clamped to [32 MiB, 48 MiB] (>= every
    # generation's default scoped limit, < v7x's 64 MiB physical VMEM).
    io = 2 * block_b * (BLUE_INPUT_DIM + PAD) * 4
    params = 2 * NUM_LINEAR * (PAD * PAD + PAD) * 4
    acts = 6 * block_b * PAD * 4
    est = io + params + acts + (4 << 20)
    return int(min(max(est, 32 << 20), 48 << 20))


@functools.partial(jax.jit, static_argnames=("block_b", "num_splits"))
def _blue_forward_padded(x_pad, w_packed, b_packed, block_b, num_splits):
    """x_pad: (B_pad, 16) with B_pad % block_b == 0. Returns (B_pad, 128)."""
    b_pad = x_pad.shape[0]
    grid = (b_pad // block_b,)
    kernel = functools.partial(_mlp_kernel, num_splits=num_splits)
    return pl.pallas_call(
        kernel,
        out_shape=jax.ShapeDtypeStruct((b_pad, PAD), jnp.float32),
        grid=grid,
        in_specs=[
            # Un-padded 16-lane input: legal because the last block dim equals
            # the full array dim.
            pl.BlockSpec((block_b, BLUE_INPUT_DIM), lambda i: (i, 0)),
            # Constant block index -> Pallas keeps the ~450 KiB parameter pack
            # resident in VMEM; no per-grid-step re-DMA.
            pl.BlockSpec((NUM_LINEAR, PAD, PAD), lambda i: (0, 0, 0)),
            pl.BlockSpec((NUM_LINEAR, 1, PAD), lambda i: (0, 0, 0)),
        ],
        out_specs=pl.BlockSpec((block_b, PAD), lambda i: (i, 0)),
        compiler_params=pltpu.CompilerParams(
            dimension_semantics=("parallel",),
            vmem_limit_bytes=_vmem_limit_bytes(block_b),
        ),
    )(x_pad, w_packed, b_packed)


def blue_model_forward(x, w_packed, b_packed, block_b=4096):
    """x: (B, 16) f32.  w_packed: (7,128,128).  b_packed: (7,1,128)."""
    B, D = x.shape
    assert D == BLUE_INPUT_DIM

    # Tiling: amortize per-grid-step overhead with big tiles, balance the grid
    # so a batch just past a tile boundary doesn't pad by a whole block, and
    # keep >= 2 grid steps once B >= 512 so v7x's two TensorCores both get
    # ("parallel",) work. Tiny batches collapse to a single small block.
    num_tiles = _cdiv(B, block_b)
    if num_tiles == 1 and B >= 2 * _MIN_ROWS_PER_TILE:
        num_tiles = 2
    eff_block = _round_up(_cdiv(B, num_tiles), 8)
    b_pad = eff_block * num_tiles

    # Two interleaved sub-chains per tile when the tile splits cleanly into
    # >= 8-row halves and is big enough to matter.
    num_splits = 2 if (eff_block % 16 == 0 and eff_block >= 128) else 1

    if b_pad == B:
        x_in = x
    else:
        x_in = jnp.zeros((b_pad, BLUE_INPUT_DIM), x.dtype).at[:B].set(x)

    out = _blue_forward_padded(x_in, w_packed, b_packed, eff_block, num_splits)
    return out[:B, :BLUE_OUTPUT_DIM]


def pack_params(weights, biases):
    """Zero-pad per-layer (in,out) weights / (1,out) biases into packed arrays."""
    w_packed = jnp.zeros((NUM_LINEAR, PAD, PAD), jnp.float32)
    b_packed = jnp.zeros((NUM_LINEAR, 1, PAD), jnp.float32)
    for li, (w, b) in enumerate(zip(weights, biases)):
        fi, fo = w.shape
        w_packed = w_packed.at[li, :fi, :fo].set(w)
        b_packed = b_packed.at[li, 0, :fo].set(jnp.reshape(b, (-1,)))
    return w_packed, b_packed


def init_params(key):
    """Deterministic init mimicking PyTorch's default Linear init
    (uniform in [-1/sqrt(fan_in), 1/sqrt(fan_in)]); weights stored (in, out)."""
    dims = (
        [BLUE_INPUT_DIM]
        + [BLUE_FIRST_UNITS]
        + [BLUE_HIDDEN_UNITS] * NUM_HIDDEN_LAYERS_BLUE
        + [BLUE_OUTPUT_DIM]
    )
    weights, biases = [], []
    for li in range(NUM_LINEAR):
        fan_in, fan_out = dims[li], dims[li + 1]
        key, kw, kb = jax.random.split(key, 3)
        bound = 1.0 / jnp.sqrt(fan_in)
        w = jax.random.uniform(
            kw, (fan_in, fan_out), jnp.float32, minval=-bound, maxval=bound
        )
        b = jax.random.uniform(
            kb, (1, fan_out), jnp.float32, minval=-bound, maxval=bound
        )
        weights.append(w)
        biases.append(b)
    return weights, biases


def reference_forward(x, weights, biases):
    h = x
    for li, (w, b) in enumerate(zip(weights, biases)):
        h = h @ w + b
        if li < NUM_LINEAR - 1:
            h = jnp.maximum(h, 0.0)
        else:
            h = jax.nn.sigmoid(h)
    return h


if __name__ == "__main__":
    key = jax.random.PRNGKey(0)
    key, kx1, kx2, kx3 = jax.random.split(key, 4)

    weights, biases = init_params(key)
    w_packed, b_packed = pack_params(weights, biases)

    def check(x):
        out = jax.block_until_ready(blue_model_forward(x, w_packed, b_packed))
        ref = reference_forward(x, weights, biases)
        assert out.shape == (x.shape[0], BLUE_OUTPUT_DIM)
        assert jnp.allclose(out, ref, atol=1e-5, rtol=1e-5), (
            f"max err {jnp.max(jnp.abs(out - ref))}"
        )

    # Small batch: single block, single chain, no padding.
    check(jax.random.normal(kx1, (8, BLUE_INPUT_DIM), jnp.float32))

    # Ragged batch: exercises batch-row padding (padded to 16 rows, sliced off).
    check(jax.random.normal(kx2, (13, BLUE_INPUT_DIM), jnp.float32))

    # Larger batch: 2 balanced grid steps (256-row tiles), 2 sub-chains/tile.
    check(jax.random.normal(kx3, (512, BLUE_INPUT_DIM), jnp.float32))

    print("KERNEL_OK")
</pallas_src>

<mosaic_0001>
module attributes {stable_mosaic.version = 11 : i64} {
  func.func @_mlp_kernel(%arg0: i32, %arg1: memref<8x16xf32, #tpu.memory_space<vmem>>, %arg2: memref<7x128x128xf32, #tpu.memory_space<vmem>>, %arg3: memref<7x1x128xf32, #tpu.memory_space<vmem>>, %arg4: memref<8x128xf32, #tpu.memory_space<vmem>>) attributes {dimension_semantics = [#tpu.dimension_semantics<parallel>], iteration_bounds = array<i64: 1>, scalar_prefetch = 0 : i64, scratch_operands = 0 : i64, tpu.core_type = #tpu.core_type<tc>, window_params = [{transform_indices = @transform_0, window_bounds = array<i64: 8, 16>}, {pipeline_mode = #tpu.pipeline_mode<synchronous>, transform_indices = @transform_1, window_bounds = array<i64: 7, 128, 128>}, {pipeline_mode = #tpu.pipeline_mode<synchronous>, transform_indices = @transform_2, window_bounds = array<i64: 7, 1, 128>}, {transform_indices = @transform_3, window_bounds = array<i64: 8, 128>}]} {
    %c0 = arith.constant 0 : index
    %c0_0 = arith.constant 0 : index
    %0 = vector.load %arg1[%c0, %c0_0] : memref<8x16xf32, #tpu.memory_space<vmem>>, vector<8x16xf32>
    %c0_1 = arith.constant 0 : index
    %c0_2 = arith.constant 0 : index
    %c0_3 = arith.constant 0 : index
    %1 = vector.load %arg2[%c0_1, %c0_2, %c0_3] : memref<7x128x128xf32, #tpu.memory_space<vmem>>, vector<1x16x128xf32>
    %2 = vector.shape_cast %1 : vector<1x16x128xf32> to vector<16x128xf32>
    %c0_4 = arith.constant 0 : index
    %c0_5 = arith.constant 0 : index
    %c0_6 = arith.constant 0 : index
    %3 = vector.load %arg3[%c0_4, %c0_5, %c0_6] : memref<7x1x128xf32, #tpu.memory_space<vmem>>, vector<1x1x128xf32>
    %4 = vector.shape_cast %3 : vector<1x1x128xf32> to vector<1x128xf32>
    %cst = arith.constant dense<0.000000e+00> : vector<8x128xf32>
    %5 = tpu.matmul %0, %2, %cst {dimension_numbers = #tpu.dot_dimension_numbers<[1], [0], [0], [1], [0, 0, 1, 1], [], []>} : vector<8x16xf32>, vector<16x128xf32>, vector<8x128xf32> -> vector<8x128xf32>
    %6 = vector.broadcast %4 : vector<1x128xf32> to vector<8x128xf32>
    %7 = arith.addf %5, %6 : vector<8x128xf32>
    %cst_7 = arith.constant 0.000000e+00 : f32
    %8 = vector.broadcast %cst_7 : f32 to vector<8x128xf32>
    %9 = arith.maximumf %7, %8 : vector<8x128xf32>
    %c1 = arith.constant 1 : index
    %c0_8 = arith.constant 0 : index
    %c0_9 = arith.constant 0 : index
    %10 = vector.load %arg2[%c1, %c0_8, %c0_9] : memref<7x128x128xf32, #tpu.memory_space<vmem>>, vector<1x128x128xf32>
    %11 = vector.shape_cast %10 : vector<1x128x128xf32> to vector<128x128xf32>
    %c1_10 = arith.constant 1 : index
    %c0_11 = arith.constant 0 : index
    %c0_12 = arith.constant 0 : index
    %12 = vector.load %arg3[%c1_10, %c0_11, %c0_12] : memref<7x1x128xf32, #tpu.memory_space<vmem>>, vector<1x1x128xf32>
    %13 = vector.shape_cast %12 : vector<1x1x128xf32> to vector<1x128xf32>
    %cst_13 = arith.constant dense<0.000000e+00> : vector<8x128xf32>
    %14 = tpu.matmul %9, %11, %cst_13 {dimension_numbers = #tpu.dot_dimension_numbers<[1], [0], [0], [1], [0, 0, 1, 1], [], []>} : vector<8x128xf32>, vector<128x128xf32>, vector<8x128xf32> -> vector<8x128xf32>
    %15 = vector.broadcast %13 : vector<1x128xf32> to vector<8x128xf32>
    %16 = arith.addf %14, %15 : vector<8x128xf32>
    %cst_14 = arith.constant 0.000000e+00 : f32
    %17 = vector.broadcast %cst_14 : f32 to vector<8x128xf32>
    %18 = arith.maximumf %16, %17 : vector<8x128xf32>
    %c2 = arith.constant 2 : index
    %c0_15 = arith.constant 0 : index
    %c0_16 = arith.constant 0 : index
    %19 = vector.load %arg2[%c2, %c0_15, %c0_16] : memref<7x128x128xf32, #tpu.memory_space<vmem>>, vector<1x128x128xf32>
    %20 = vector.shape_cast %19 : vector<1x128x128xf32> to vector<128x128xf32>
    %c2_17 = arith.constant 2 : index
    %c0_18 = arith.constant 0 : index
    %c0_19 = arith.constant 0 : index
    %21 = vector.load %arg3[%c2_17, %c0_18, %c0_19] : memref<7x1x128xf32, #tpu.memory_space<vmem>>, vector<1x1x128xf32>
    %22 = vector.shape_cast %21 : vector<1x1x128xf32> to vector<1x128xf32>
    %cst_20 = arith.constant dense<0.000000e+00> : vector<8x128xf32>
    %23 = tpu.matmul %18, %20, %cst_20 {dimension_numbers = #tpu.dot_dimension_numbers<[1], [0], [0], [1], [0, 0, 1, 1], [], []>} : vector<8x128xf32>, vector<128x128xf32>, vector<8x128xf32> -> vector<8x128xf32>
    %24 = vector.broadcast %22 : vector<1x128xf32> to vector<8x128xf32>
    %25 = arith.addf %23, %24 : vector<8x128xf32>
    %cst_21 = arith.constant 0.000000e+00 : f32
    %26 = vector.broadcast %cst_21 : f32 to vector<8x128xf32>
    %27 = arith.maximumf %25, %26 : vector<8x128xf32>
    %c3 = arith.constant 3 : index
    %c0_22 = arith.constant 0 : index
    %c0_23 = arith.constant 0 : index
    %28 = vector.load %arg2[%c3, %c0_22, %c0_23] : memref<7x128x128xf32, #tpu.memory_space<vmem>>, vector<1x128x128xf32>
    %29 = vector.shape_cast %28 : vector<1x128x128xf32> to vector<128x128xf32>
    %c3_24 = arith.constant 3 : index
    %c0_25 = arith.constant 0 : index
    %c0_26 = arith.constant 0 : index
    %30 = vector.load %arg3[%c3_24, %c0_25, %c0_26] : memref<7x1x128xf32, #tpu.memory_space<vmem>>, vector<1x1x128xf32>
    %31 = vector.shape_cast %30 : vector<1x1x128xf32> to vector<1x128xf32>
    %cst_27 = arith.constant dense<0.000000e+00> : vector<8x128xf32>
    %32 = tpu.matmul %27, %29, %cst_27 {dimension_numbers = #tpu.dot_dimension_numbers<[1], [0], [0], [1], [0, 0, 1, 1], [], []>} : vector<8x128xf32>, vector<128x128xf32>, vector<8x128xf32> -> vector<8x128xf32>
    %33 = vector.broadcast %31 : vector<1x128xf32> to vector<8x128xf32>
    %34 = arith.addf %32, %33 : vector<8x128xf32>
    %cst_28 = arith.constant 0.000000e+00 : f32
    %35 = vector.broadcast %cst_28 : f32 to vector<8x128xf32>
    %36 = arith.maximumf %34, %35 : vector<8x128xf32>
    %c4 = arith.constant 4 : index
    %c0_29 = arith.constant 0 : index
    %c0_30 = arith.constant 0 : index
    %37 = vector.load %arg2[%c4, %c0_29, %c0_30] : memref<7x128x128xf32, #tpu.memory_space<vmem>>, vector<1x128x128xf32>
    %38 = vector.shape_cast %37 : vector<1x128x128xf32> to vector<128x128xf32>
    %c4_31 = arith.constant 4 : index
    %c0_32 = arith.constant 0 : index
    %c0_33 = arith.constant 0 : index
    %39 = vector.load %arg3[%c4_31, %c0_32, %c0_33] : memref<7x1x128xf32, #tpu.memory_space<vmem>>, vector<1x1x128xf32>
    %40 = vector.shape_cast %39 : vector<1x1x128xf32> to vector<1x128xf32>
    %cst_34 = arith.constant dense<0.000000e+00> : vector<8x128xf32>
    %41 = tpu.matmul %36, %38, %cst_34 {dimension_numbers = #tpu.dot_dimension_numbers<[1], [0], [0], [1], [0, 0, 1, 1], [], []>} : vector<8x128xf32>, vector<128x128xf32>, vector<8x128xf32> -> vector<8x128xf32>
    %42 = vector.broadcast %40 : vector<1x128xf32> to vector<8x128xf32>
    %43 = arith.addf %41, %42 : vector<8x128xf32>
    %cst_35 = arith.constant 0.000000e+00 : f32
    %44 = vector.broadcast %cst_35 : f32 to vector<8x128xf32>
    %45 = arith.maximumf %43, %44 : vector<8x128xf32>
    %c5 = arith.constant 5 : index
    %c0_36 = arith.constant 0 : index
    %c0_37 = arith.constant 0 : index
    %46 = vector.load %arg2[%c5, %c0_36, %c0_37] : memref<7x128x128xf32, #tpu.memory_space<vmem>>, vector<1x128x128xf32>
    %47 = vector.shape_cast %46 : vector<1x128x128xf32> to vector<128x128xf32>
    %c5_38 = arith.constant 5 : index
    %c0_39 = arith.constant 0 : index
    %c0_40 = arith.constant 0 : index
    %48 = vector.load %arg3[%c5_38, %c0_39, %c0_40] : memref<7x1x128xf32, #tpu.memory_space<vmem>>, vector<1x1x128xf32>
    %49 = vector.shape_cast %48 : vector<1x1x128xf32> to vector<1x128xf32>
    %cst_41 = arith.constant dense<0.000000e+00> : vector<8x128xf32>
    %50 = tpu.matmul %45, %47, %cst_41 {dimension_numbers = #tpu.dot_dimension_numbers<[1], [0], [0], [1], [0, 0, 1, 1], [], []>} : vector<8x128xf32>, vector<128x128xf32>, vector<8x128xf32> -> vector<8x128xf32>
    %51 = vector.broadcast %49 : vector<1x128xf32> to vector<8x128xf32>
    %52 = arith.addf %50, %51 : vector<8x128xf32>
    %cst_42 = arith.constant 0.000000e+00 : f32
    %53 = vector.broadcast %cst_42 : f32 to vector<8x128xf32>
    %54 = arith.maximumf %52, %53 : vector<8x128xf32>
    %c6 = arith.constant 6 : index
    %c0_43 = arith.constant 0 : index
    %c0_44 = arith.constant 0 : index
    %55 = vector.load %arg2[%c6, %c0_43, %c0_44] : memref<7x128x128xf32, #tpu.memory_space<vmem>>, vector<1x128x128xf32>
    %56 = vector.shape_cast %55 : vector<1x128x128xf32> to vector<128x128xf32>
    %c6_45 = arith.constant 6 : index
    %c0_46 = arith.constant 0 : index
    %c0_47 = arith.constant 0 : index
    %57 = vector.load %arg3[%c6_45, %c0_46, %c0_47] : memref<7x1x128xf32, #tpu.memory_space<vmem>>, vector<1x1x128xf32>
    %58 = vector.shape_cast %57 : vector<1x1x128xf32> to vector<1x128xf32>
    %cst_48 = arith.constant dense<0.000000e+00> : vector<8x128xf32>
    %59 = tpu.matmul %54, %56, %cst_48 {dimension_numbers = #tpu.dot_dimension_numbers<[1], [0], [0], [1], [0, 0, 1, 1], [], []>} : vector<8x128xf32>, vector<128x128xf32>, vector<8x128xf32> -> vector<8x128xf32>
    %60 = vector.broadcast %58 : vector<1x128xf32> to vector<8x128xf32>
    %61 = arith.addf %59, %60 : vector<8x128xf32>
    %62 = arith.negf %61 : vector<8x128xf32>
    %63 = math.exp %62 : vector<8x128xf32>
    %cst_49 = arith.constant 1.000000e+00 : f32
    %64 = vector.broadcast %cst_49 : f32 to vector<8x128xf32>
    %65 = arith.addf %64, %63 : vector<8x128xf32>
    %66 = arith.divf %64, %65 : vector<8x128xf32>
    %c0_50 = arith.constant 0 : index
    %c0_51 = arith.constant 0 : index
    %67 = vector.load %arg4[%c0_50, %c0_51] : memref<8x128xf32, #tpu.memory_space<vmem>>, vector<8x128xf32>
    tpu.vector_store %arg4[%c0_50, %c0_51], %66 {strides = array<i32>} : memref<8x128xf32, #tpu.memory_space<vmem>>, vector<8x128xf32>,
    return
  }
  func.func @transform_0(%arg0: i32) -> (i32, i32) {
    %c0_i32 = arith.constant 0 : i32
    %c0_i32_0 = arith.constant 0 : i32
    return %arg0, %c0_i32 : i32, i32
  }
  func.func @transform_1(%arg0: i32) -> (i32, i32, i32) {
    %c0_i32 = arith.constant 0 : i32
    %c0_i32_0 = arith.constant 0 : i32
    %c0_i32_1 = arith.constant 0 : i32
    %c0_i32_2 = arith.constant 0 : i32
    return %c0_i32, %c0_i32_0, %c0_i32_1 : i32, i32, i32
  }
  func.func @transform_2(%arg0: i32) -> (i32, i32, i32) {
    %c0_i32 = arith.constant 0 : i32
    %c0_i32_0 = arith.constant 0 : i32
    %c0_i32_1 = arith.constant 0 : i32
    %c0_i32_2 = arith.constant 0 : i32
    return %c0_i32, %c0_i32_0, %c0_i32_1 : i32, i32, i32
  }
  func.func @transform_3(%arg0: i32) -> (i32, i32) {
    %c0_i32 = arith.constant 0 : i32
    %c0_i32_0 = arith.constant 0 : i32
    return %arg0, %c0_i32 : i32, i32
  }
}

</mosaic_0001>

<bundles_post_ra>
// kernel: _blue_forward_padded.1
= control target key start
LH: loop header
LB: loop body
LE: loop exit
PB: predicated region body
PF: predicated region fallthrough
CT: control target
= control target key end

     0   :  { %8 = vsyncpa [#allocation3], 0  ;;  %s550_s0 = inlined_call_operand.hbm [shape: f32[8,16], index: 0, kind: input, shape index: {}]   ;;  %s551_s1 = inlined_call_operand.hbm [shape: f32[7,128,128], index: 1, kind: input, shape index: {}]   ;;  %s552_s2 = inlined_call_operand.hbm [shape: f32[7,1,128], index: 2, kind: input, shape index: {}]   ;;  %s553_s3 = inlined_call_operand.hbm [shape: f32[8,128], index: 3, kind: output, shape index: {}]  }
   0x1   :  { %9 = vsyncpa [#allocation6], 0  ;;  %s26_s14 = sshll.u32 %s551_s1, 4  ;;  %s27_s14 = int_to_ptr.hbm [resolvable:$true] %s26_s14 }
   0x2   :  { %10 = vsyncpa [#allocation4], 0  ;;  %s510_s15 = smov [#allocation5]   ;;  %s16_s19 = sshll.u32 %s550_s0, 4  ;;  %s17_s19 = int_to_ptr.hbm [resolvable:$true] %s16_s19 }
   0x3   :  { %s28_s16 = sshll.u32 %s510_s15, 4  ;;  %s511_s20 = smov 128   ;;  %s29_s16 = int_to_ptr.vmem [resolvable:$true] %s28_s16 }
   0x4   :  { %s512_s21 = smov 8   ;;  %s513_s22 = smov [#allocation2]  }
   0x5   :  { %34 = dma.hbm_to_vmem [thread:$0]  %s27_s14, 14336, %s29_s16, [#allocation6], %s511_s20, %s511_s20, %s512_s21  }
   0x6   :  { %s18_s23 = sshll.u32 %s513_s22, 4  ;;  %s39_s26 = sshll.u32 %s552_s2, 4  ;;  %s19_s23 = int_to_ptr.vmem [resolvable:$true] %s18_s23  ;;  %s40_s26 = int_to_ptr.hbm [resolvable:$true] %s39_s26 }
   0x7   :  { %21 = dma.hbm_to_vmem [thread:$0]  %s17_s19, 128, %s19_s23, [#allocation3]  }
   0x8   :  { %s514_s1 = smov [#allocation7]   ;;  %s515_s28 = smov 16  }
   0x9   :  { %s41_s27 = sshll.u32 %s514_s1, 4  ;;  %s516_s29 = smov 1   ;;  %s42_s27 = int_to_ptr.vmem [resolvable:$true] %s41_s27 }
   0xa   :  { %47 = dma.hbm_to_vmem [thread:$0]  %s40_s26, 112, %s42_s27, [#allocation6], %s515_s28, %s515_s28, %s516_s29  }
   0xb   :  { %504 = dma.done.wait [#allocation3], 128  }
   0xc   :  { %505 = vsyncadd [#allocation3], 4294967168 }
   0xd   :  { %506 = dma.done.wait [#allocation6], 14448  }
   0xe   :  { %507 = vsyncadd [#allocation6], 4294952848  ;;  %v62_v0 = vld [vmem:[#allocation5 + $0x8] sm:$0xff]  ;;  %v61_v1 = vld [vmem:[#allocation5] sm:$0xff]  ;;  %vm67_vm0 = vcmask 130048   ;;  %s517_s0 = smov [#allocation8]  }
   0xf   :  { %85 = vmatpush.msra.mxu0 %v62_v0  ;;  %v60_v2 = vld [vmem:[#allocation2] sm:$0xff]  ;;  %v107_v4 = vld [vmem:[#allocation5 + $0xf0] sm:$0xff]  ;;  %v106_v5 = vld [vmem:[#allocation5 + $0xe8] sm:$0xff]  ;;  %s374_s2 = sshll.u32 %s517_s0, 4  ;;  %s376_s5 = sshll.u32 %s553_s3, 4  ;;  %s375_s2 = int_to_ptr.vmem [resolvable:$true] %s374_s2  ;;  %s377_s5 = int_to_ptr.hbm [resolvable:$true] %s376_s5 }
  0x10   :  { %v108_v3 = vld [vmem:[#allocation5 + $0xf8] sm:$0xff]  ;;  %v105_v6 = vld [vmem:[#allocation5 + $0xe0] sm:$0xff]  ;;  %v103_v8 = vld [vmem:[#allocation5 + $0xd0] sm:$0xff] }
  0x11   :  { %114 = vmatpush.msra.mxu1 %v108_v3  ;;  %86 = vmatpush.msra.mxu0 %v61_v1  ;;  %v104_v7 = vld [vmem:[#allocation5 + $0xd8] sm:$0xff]  ;;  %v102_v9 = vld [vmem:[#allocation5 + $0xc8] sm:$0xff]  ;;  %v101_v10 = vld [vmem:[#allocation5 + $0xc0] sm:$0xff] }
  0x12   :  { %387 = vmatmul.msk.f32.vlgmr.msra.gmra.mxu0 %vm67_vm0, %v60_v2  ;;  %v100_v11 = vld [vmem:[#allocation5 + $0xb8] sm:$0xff]  ;;  %v99_v12 = vld [vmem:[#allocation5 + $0xb0] sm:$0xff]  ;;  %v98_v13 = vld [vmem:[#allocation5 + $0xa8] sm:$0xff] }
  0x13   :  { %115 = vmatpush.msra.mxu1 %v107_v4  ;;  %v97_v14 = vld [vmem:[#allocation5 + $0xa0] sm:$0xff]  ;;  %v96_v15 = vld [vmem:[#allocation5 + $0x98] sm:$0xff]  ;;  %v95_v16 = vld [vmem:[#allocation5 + $0x90] sm:$0xff] }
  0x14   :  { %v94_v17 = vld [vmem:[#allocation5 + $0x88] sm:$0xff]  ;;  %v93_v18 = vld [vmem:[#allocation5 + $0x80] sm:$0xff]  ;;  %v151_v19 = vld [vmem:[#allocation5 + $0x178] sm:$0xff] }
  0x15   :  { %116 = vmatpush.msra.mxu1 %v106_v5  ;;  %v150_v20 = vld [vmem:[#allocation5 + $0x170] sm:$0xff]  ;;  %157 = vmatpush.msra.mxu2 %v151_v19  ;;  %v149_v21 = vld [vmem:[#allocation5 + $0x168] sm:$0xff]  ;;  %v148_v22 = vld [vmem:[#allocation5 + $0x160] sm:$0xff] }
  0x16   :  { %v147_v23 = vld [vmem:[#allocation5 + $0x158] sm:$0xff]  ;;  %v146_v24 = vld [vmem:[#allocation5 + $0x150] sm:$0xff]  ;;  %v145_v25 = vld [vmem:[#allocation5 + $0x148] sm:$0xff] }
  0x17   :  { %117 = vmatpush.msra.mxu1 %v105_v6  ;;  %158 = vmatpush.msra.mxu2 %v150_v20  ;;  %v144_v26 = vld [vmem:[#allocation5 + $0x140] sm:$0xff]  ;;  %v143_v27 = vld [vmem:[#allocation5 + $0x138] sm:$0xff]  ;;  %v142_v28 = vld [vmem:[#allocation5 + $0x130] sm:$0xff] }
  0x18   :  { %v141_v29 = vld [vmem:[#allocation5 + $0x128] sm:$0xff]  ;;  %v140_v30 = vld [vmem:[#allocation5 + $0x120] sm:$0xff]  ;;  %v139_v31 = vld [vmem:[#allocation5 + $0x118] sm:$0xff] }
  0x19   :  { %118 = vmatpush.msra.mxu1 %v104_v7  ;;  %159 = vmatpush.msra.mxu2 %v149_v21  ;;  %v397_v32 = vld [vmem:[#allocation7] ss:$0 sm:$0xff]  ;;  %v138_v36 = vld [vmem:[#allocation5 + $0x110] sm:$0xff]  ;;  %v137_v37 = vld [vmem:[#allocation5 + $0x108] sm:$0xff] }
  0x1a   :  { %v136_v38 = vld [vmem:[#allocation5 + $0x100] sm:$0xff]  ;;  %v194_v39 = vld [vmem:[#allocation5 + $0x1f8] sm:$0xff]  ;;  %v193_v40 = vld [vmem:[#allocation5 + $0x1f0] sm:$0xff] }
  0x1b   :  { %119 = vmatpush.msra.mxu1 %v103_v8  ;;  %160 = vmatpush.msra.mxu2 %v148_v22  ;;  %v192_v41 = vld [vmem:[#allocation5 + $0x1e8] sm:$0xff]  ;;  %v191_v42 = vld [vmem:[#allocation5 + $0x1e0] sm:$0xff]  ;;  %v190_v43 = vld [vmem:[#allocation5 + $0x1d8] sm:$0xff] }
  0x1c   :  { %200 = vmatpush.msra.mxu3 %v194_v39  ;;  %v189_v44 = vld [vmem:[#allocation5 + $0x1d0] sm:$0xff]  ;;  %v188_v45 = vld [vmem:[#allocation5 + $0x1c8] sm:$0xff]  ;;  %v187_v46 = vld [vmem:[#allocation5 + $0x1c0] sm:$0xff] }
  0x1d   :  { %120 = vmatpush.msra.mxu1 %v102_v9  ;;  %161 = vmatpush.msra.mxu2 %v147_v23  ;;  %v186_v47 = vld [vmem:[#allocation5 + $0x1b8] sm:$0xff]  ;;  %v185_v48 = vld [vmem:[#allocation5 + $0x1b0] sm:$0xff]  ;;  %v184_v49 = vld [vmem:[#allocation5 + $0x1a8] sm:$0xff] }
  0x1e   :  { %201 = vmatpush.msra.mxu3 %v193_v40  ;;  %v183_v50 = vld [vmem:[#allocation5 + $0x1a0] sm:$0xff]  ;;  %v182_v51 = vld [vmem:[#allocation5 + $0x198] sm:$0xff]  ;;  %v181_v56 = vld [vmem:[#allocation5 + $0x190] sm:$0xff] }
  0x1f   :  { %121 = vmatpush.msra.mxu1 %v101_v10  ;;  %162 = vmatpush.msra.mxu2 %v146_v24  ;;  %v398_v52 = vld [vmem:[#allocation7 + $0x1] ss:$0 sm:$0xff]  ;;  %v180_v57 = vld [vmem:[#allocation5 + $0x188] sm:$0xff]  ;;  %v237_v59 = vld [vmem:[#allocation5 + $0x278] sm:$0xff] }
  0x20   :  { %202 = vmatpush.msra.mxu3 %v192_v41  ;;  %v179_v58 = vld [vmem:[#allocation5 + $0x180] sm:$0xff]  ;;  %v236_v60 = vld [vmem:[#allocation5 + $0x270] sm:$0xff]  ;;  %243 = vmatpush.msrb.mxu0 %v237_v59  ;;  %v235_v61 = vld [vmem:[#allocation5 + $0x268] sm:$0xff] }
  0x21   :  { %122 = vmatpush.msra.mxu1 %v100_v11  ;;  %163 = vmatpush.msra.mxu2 %v145_v25  ;;  %v234_v62 = vld [vmem:[#allocation5 + $0x260] sm:$0xff]  ;;  %v233_v63 = vld [vmem:[#allocation5 + $0x258] sm:$0xff]  ;;  %v232_v0 = vld [vmem:[#allocation5 + $0x250] sm:$0xff] }
  0x22   :  { %203 = vmatpush.msra.mxu3 %v191_v42  ;;  %244 = vmatpush.msrb.mxu0 %v236_v60  ;;  %v231_v1 = vld [vmem:[#allocation5 + $0x248] sm:$0xff]  ;;  %v230_v2 = vld [vmem:[#allocation5 + $0x240] sm:$0xff]  ;;  %v229_v3 = vld [vmem:[#allocation5 + $0x238] sm:$0xff] }
  0x23   :  { %123 = vmatpush.msra.mxu1 %v99_v12  ;;  %164 = vmatpush.msra.mxu2 %v144_v26  ;;  %v228_v4 = vld [vmem:[#allocation5 + $0x230] sm:$0xff]  ;;  %v227_v5 = vld [vmem:[#allocation5 + $0x228] sm:$0xff]  ;;  %v226_v6 = vld [vmem:[#allocation5 + $0x220] sm:$0xff] }
  0x24   :  { %204 = vmatpush.msra.mxu3 %v190_v43  ;;  %245 = vmatpush.msrb.mxu0 %v235_v61  ;;  %v225_v7 = vld [vmem:[#allocation5 + $0x218] sm:$0xff]  ;;  %v399_v8 = vld [vmem:[#allocation7 + $0x2] ss:$0 sm:$0xff]  ;;  %v224_v12 = vld [vmem:[#allocation5 + $0x210] sm:$0xff] }
  0x25   :  { %124 = vmatpush.msra.mxu1 %v98_v13  ;;  %165 = vmatpush.msra.mxu2 %v143_v27  ;;  %v223_v13 = vld [vmem:[#allocation5 + $0x208] sm:$0xff]  ;;  %v276_v19 = vld [vmem:[#allocation5 + $0x2d8] sm:$0xff]  ;;  %v275_v20 = vld [vmem:[#allocation5 + $0x2d0] sm:$0xff] }
  0x26   :  { %205 = vmatpush.msra.mxu3 %v189_v44  ;;  %246 = vmatpush.msrb.mxu0 %v234_v62  ;;  %v274_v21 = vld [vmem:[#allocation5 + $0x2c8] sm:$0xff]  ;;  %v273_v22 = vld [vmem:[#allocation5 + $0x2c0] sm:$0xff]  ;;  %v272_v23 = vld [vmem:[#allocation5 + $0x2b8] sm:$0xff] }
  0x27   :  { %125 = vmatpush.msra.mxu1 %v97_v14  ;;  %166 = vmatpush.msra.mxu2 %v142_v28  ;;  %v222_v14 = vld [vmem:[#allocation5 + $0x200] sm:$0xff]  ;;  %v271_v24 = vld [vmem:[#allocation5 + $0x2b0] sm:$0xff]  ;;  %v270_v25 = vld [vmem:[#allocation5 + $0x2a8] sm:$0xff] }
  0x28   :  { %206 = vmatpush.msra.mxu3 %v188_v45  ;;  %247 = vmatpush.msrb.mxu0 %v233_v63  ;;  %v269_v26 = vld [vmem:[#allocation5 + $0x2a0] sm:$0xff]  ;;  %v268_v27 = vld [vmem:[#allocation5 + $0x298] sm:$0xff]  ;;  %v318_v40 = vld [vmem:[#allocation5 + $0x350] sm:$0xff] }
  0x29   :  { %126 = vmatpush.msra.mxu1 %v96_v15  ;;  %167 = vmatpush.msra.mxu2 %v141_v29  ;;  %v280_v15 = vld [vmem:[#allocation5 + $0x2f8] sm:$0xff]  ;;  %v400_v28 = vld [vmem:[#allocation7 + $0x3] ss:$0 sm:$0xff]  ;;  %v317_v41 = vld [vmem:[#allocation5 + $0x348] sm:$0xff] }
  0x2a   :  { %207 = vmatpush.msra.mxu3 %v187_v46  ;;  %248 = vmatpush.msrb.mxu0 %v232_v0  ;;  %v319_v39 = vld [vmem:[#allocation5 + $0x358] sm:$0xff]  ;;  %v316_v42 = vld [vmem:[#allocation5 + $0x340] sm:$0xff]  ;;  %v314_v44 = vld [vmem:[#allocation5 + $0x330] sm:$0xff] }
  0x2b   :  { %127 = vmatpush.msra.mxu1 %v95_v16  ;;  %168 = vmatpush.msra.mxu2 %v140_v30  ;;  %v279_v16 = vld [vmem:[#allocation5 + $0x2f0] sm:$0xff]  ;;  %v315_v43 = vld [vmem:[#allocation5 + $0x338] sm:$0xff]  ;;  %v313_v45 = vld [vmem:[#allocation5 + $0x328] sm:$0xff] }
  0x2c   :  { %208 = vmatpush.msra.mxu3 %v186_v47  ;;  %249 = vmatpush.msrb.mxu0 %v231_v1  ;;  %v312_v46 = vld [vmem:[#allocation5 + $0x320] sm:$0xff]  ;;  %v311_v47 = vld [vmem:[#allocation5 + $0x318] sm:$0xff] }
  0x2d   :  { %128 = vmatpush.msra.mxu1 %v94_v17  ;;  %169 = vmatpush.msra.mxu2 %v139_v31  ;;  %v278_v17 = vld [vmem:[#allocation5 + $0x2e8] sm:$0xff]  ;;  %v403_v59 = vld [vmem:[#allocation7 + $0x6] ss:$0 sm:$0xff] }
  0x2e   :  { %209 = vmatpush.msra.mxu3 %v185_v48  ;;  %250 = vmatpush.msrb.mxu0 %v230_v2  ;;  %v401_v48 = vld [vmem:[#allocation7 + $0x4] ss:$0 sm:$0xff] }
  0x2f   :  { %129 = vmatpush.msra.mxu1 %v93_v18  ;;  %170 = vmatpush.msra.mxu2 %v138_v36  ;;  %v277_v18 = vld [vmem:[#allocation5 + $0x2e0] sm:$0xff]  ;;  %v322_v36 = vld [vmem:[#allocation5 + $0x370] sm:$0xff] }
  0x30   :  { %210 = vmatpush.msra.mxu3 %v184_v49  ;;  %251 = vmatpush.msrb.mxu0 %v229_v3 }
  0x31   :  { %171 = vmatpush.msra.mxu2 %v137_v37  ;;  %286 = vmatpush.msrb.mxu1 %v280_v15  ;;  %v321_v37 = vld [vmem:[#allocation5 + $0x368] sm:$0xff] }
  0x32   :  { %211 = vmatpush.msra.mxu3 %v183_v50  ;;  %252 = vmatpush.msrb.mxu0 %v228_v4 }
  0x33   :  { %172 = vmatpush.msra.mxu2 %v136_v38  ;;  %287 = vmatpush.msrb.mxu1 %v279_v16  ;;  %v320_v38 = vld [vmem:[#allocation5 + $0x360] sm:$0xff] }
  0x34   :  { %212 = vmatpush.msra.mxu3 %v182_v51  ;;  %253 = vmatpush.msrb.mxu0 %v227_v5 }
  0x35   :  { %288 = vmatpush.msrb.mxu1 %v278_v17 }
  0x36   :  { %213 = vmatpush.msra.mxu3 %v181_v56  ;;  %254 = vmatpush.msrb.mxu0 %v226_v6 }
  0x37   :  { %289 = vmatpush.msrb.mxu1 %v277_v18 }
  0x38   :  { %214 = vmatpush.msra.mxu3 %v180_v57  ;;  %255 = vmatpush.msrb.mxu0 %v225_v7 }
  0x39   :  { %290 = vmatpush.msrb.mxu1 %v276_v19 }
  0x3a   :  { %215 = vmatpush.msra.mxu3 %v179_v58  ;;  %256 = vmatpush.msrb.mxu0 %v224_v12 }
  0x3b   :  { %291 = vmatpush.msrb.mxu1 %v275_v20 }
  0x3c   :  { %257 = vmatpush.msrb.mxu0 %v223_v13 }
  0x3d   :  { %292 = vmatpush.msrb.mxu1 %v274_v21 }
  0x3e   :  { %258 = vmatpush.msrb.mxu0 %v222_v14 }
  0x3f   :  { %293 = vmatpush.msrb.mxu1 %v273_v22 }
  0x41   :  { %294 = vmatpush.msrb.mxu1 %v272_v23 }
  0x43   :  { %295 = vmatpush.msrb.mxu1 %v271_v24 }
  0x45   :  { %296 = vmatpush.msrb.mxu1 %v270_v25 }
  0x47   :  { %297 = vmatpush.msrb.mxu1 %v269_v26 }
  0x49   :  { %298 = vmatpush.msrb.mxu1 %v268_v27 }
  0x8f   :  { %v88_v33 = vpop.f32.mrf.mxu0 }
  0x90   :  { %v89_v34 = vadd.f32 %v397_v32, %v88_v33  ;;  %v267_v32 = vld [vmem:[#allocation5 + $0x290] sm:$0xff]  ;;  %v266_v33 = vld [vmem:[#allocation5 + $0x288] sm:$0xff] }
  0x91   :  { %299 = vmatpush.msrb.mxu1 %v267_v32 }
  0x92   :  { %v91_v35 = vmax.f32 %v89_v34, 0.0  ;;  %v265_v34 = vld [vmem:[#allocation5 + $0x280] sm:$0xff] }
  0x93   :  { %300 = vmatpush.msrb.mxu1 %v266_v33 }
  0x94   :  { %130 = vmatmul.f32.vlgmr.msra.gmra.mxu1 %v91_v35  ;;  %v323_v35 = vld [vmem:[#allocation5 + $0x378] sm:$0xff] }
  0x95   :  { %301 = vmatpush.msrb.mxu1 %v265_v34  ;;  %329 = vmatpush.msrb.mxu2 %v323_v35 }
  0x97   :  { %330 = vmatpush.msrb.mxu2 %v322_v36 }
  0x99   :  { %331 = vmatpush.msrb.mxu2 %v321_v37 }
  0x9b   :  { %332 = vmatpush.msrb.mxu2 %v320_v38 }
  0x9d   :  { %333 = vmatpush.msrb.mxu2 %v319_v39 }
  0x9f   :  { %334 = vmatpush.msrb.mxu2 %v318_v40 }
  0xa1   :  { %335 = vmatpush.msrb.mxu2 %v317_v41 }
  0xa3   :  { %336 = vmatpush.msrb.mxu2 %v316_v42 }
  0xa5   :  { %337 = vmatpush.msrb.mxu2 %v315_v43 }
  0xa7   :  { %338 = vmatpush.msrb.mxu2 %v314_v44 }
  0xa9   :  { %339 = vmatpush.msrb.mxu2 %v313_v45 }
  0xab   :  { %340 = vmatpush.msrb.mxu2 %v312_v46 }
  0xad   :  { %341 = vmatpush.msrb.mxu2 %v311_v47 }
 0x111   :  { %v131_v53 = vpop.f32.mrf.mxu1 }
 0x112   :  { %v132_v54 = vadd.f32 %v398_v52, %v131_v53  ;;  %v310_v52 = vld [vmem:[#allocation5 + $0x310] sm:$0xff]  ;;  %v309_v53 = vld [vmem:[#allocation5 + $0x308] sm:$0xff] }
 0x113   :  { %342 = vmatpush.msrb.mxu2 %v310_v52 }
 0x114   :  { %v134_v55 = vmax.f32 %v132_v54, 0.0  ;;  %v308_v54 = vld [vmem:[#allocation5 + $0x300] sm:$0xff] }
 0x115   :  { %343 = vmatpush.msrb.mxu2 %v309_v53 }
 0x116   :  { %173 = vmatmul.f32.vlgmr.msra.gmra.mxu2 %v134_v55  ;;  %v402_v55 = vld [vmem:[#allocation7 + $0x5] ss:$0 sm:$0xff] }
 0x117   :  { %344 = vmatpush.msrb.mxu2 %v308_v54 }
 0x199   :  { %v174_v9 = vpop.f32.mrf.mxu2 }
 0x19a   :  { %v175_v10 = vadd.f32 %v399_v8, %v174_v9 }
 0x19c   :  { %v177_v11 = vmax.f32 %v175_v10, 0.0 }
 0x19e   :  { %216 = vmatmul.f32.vlgmr.msra.gmra.mxu3 %v177_v11 }
 0x221   :  { %v217_v29 = vpop.f32.mrf.mxu3 }
 0x222   :  { %v218_v30 = vadd.f32 %v400_v28, %v217_v29 }
 0x224   :  { %v220_v31 = vmax.f32 %v218_v30, 0.0 }
 0x226   :  { %259 = vmatmul.f32.vlgmr.msrb.gmra.mxu0 %v220_v31 }
 0x2a3   :  { %v260_v49 = vpop.f32.mrf.mxu0 }
 0x2a4   :  { %v261_v50 = vadd.f32 %v401_v48, %v260_v49 }
 0x2a6   :  { %v263_v51 = vmax.f32 %v261_v50, 0.0 }
 0x2a8   :  { %302 = vmatmul.f32.vlgmr.msrb.gmra.mxu1 %v263_v51 }
 0x325   :  { %v303_v56 = vpop.f32.mrf.mxu1 }
 0x326   :  { %v304_v57 = vadd.f32 %v402_v55, %v303_v56 }
 0x328   :  { %v306_v58 = vmax.f32 %v304_v57, 0.0 }
 0x32a   :  { %345 = vmatmul.f32.vlgmr.msrb.gmra.mxu2 %v306_v58 }
 0x3ad   :  { %v346_v60 = vpop.f32.mrf.mxu2 }
 0x3ae   :  { %v347_v61 = vadd.f32 %v403_v59, %v346_v60 }
 0x3b0   :  { %v388_v62 = vmul.f32 -1.442695, %v347_v61 }
 0x3b2   :  { %404 = vpow2.f32 %v388_v62 }
 0x3b8   :  { %v405_v63 = vpop.eup %404 }
 0x3b9   :  { %v352_v0 = vadd.f32 1.0, %v405_v63 }
 0x3bb   :  { %406 = vrcp.f32 %v352_v0  ;;  %v364_v4 = vand.u32 2147483648, %v352_v0  ;;  %v362_v6 = vand.u32 2147483647, %v352_v0  ;;  %vm358_vm2 = vweird.f32 %v352_v0 }
 0x3bd   :  { %v365_v8 = vor.u32 1.1754944e-38, %v364_v4  ;;  %vm363_vm4 = vcmp.eq.f32.partialorder %v362_v6, 8.507059e+37 }
 0x3c1   :  { %v407_v1 = vpop.eup %406 }
 0x3c2   :  { %v354_v2 = vmul.f32 %v407_v1, %v352_v0  ;;  %vm359_vm1 = vweird.f32 %v407_v1 }
 0x3c3   :  { %vm360_vm3 = vmor %vm358_vm2, %vm359_vm1 }
 0x3c4   :  { %v355_v3 = vsub.f32 1.0, %v354_v2 }
 0x3c6   :  { %v356_v5 = vmul.f32 %v407_v1, %v355_v3 }
 0x3c8   :  { %v357_v7 = vadd.f32 %v407_v1, %v356_v5 }
 0x3ca   :  { %v361_v9 = vsel %vm360_vm3, %v407_v1, %v357_v7 }
 0x3cb   :  { %v366_v10 = vsel %vm363_vm4, %v365_v8, %v361_v9 }
 0x3cc   :  { %368 = vst [vmem:[#allocation8] sm:$0xff] %v366_v10 }
 0x3cd   :  { %379 = dma.vmem_to_hbm [thread:$0]  %s375_s2, 128, %s377_s5, [#allocation4]  }
 0x3ce   :  { %508 = dma.done.wait [#allocation4], 128  }
 0x3cf   :  { %509 = vsyncadd [#allocation4], 4294967168 }
 0x3d0   :  { %384 = vsyncpa [#allocation3], 1 }
 0x3d1   :  { %385 = vsyncpa [#allocation6], 1 }
 0x3d2   :  { %386 = vsyncpa [#allocation4], 1 }

</bundles_post_ra>
